<compile_context>
chip_gen: v7x
topology: tpu7x:2x2x1
jax: 0.10.0
libtpu: 0.0.40
codegen_flags: <defaults>
</compile_context>

<pallas_src>
import functools

import jax
import jax.numpy as jnp
from jax.experimental import pallas as pl
from jax.experimental.pallas import tpu as pltpu

# ---------------- mixture-layer configuration (static) --------------------
NC = 4                       # number of mixture components
ND = 2                       # dimensionality of each Gaussian
P = NC + NC * ND + NC * ND   # total free-parameter width = 4 + 8 + 8 = 20
P_PAD = 128                  # free-parameter width padded to a full lane vreg


def _round_up(n, m):
    return ((n + m - 1) // m) * m


# ---------------------------- Pallas kernel -------------------------------
def mdn_kernel(x_ref, w1_ref, b1_ref, w2_ref, b2_ref, out_ref):
    # param_model: Linear -> ReLU -> Linear (MXU, f32 accumulate)
    x = x_ref[...]                                                     # (tb, F)
    h = jnp.dot(x, w1_ref[...], preferred_element_type=jnp.float32) + b1_ref[...]
    h = jnp.maximum(h, 0.0)                                            # ReLU
    p = jnp.dot(h, w2_ref[...], preferred_element_type=jnp.float32) + b2_ref[...]
    # p: (tb, P_PAD) free parameters, lane-dense (cols >= P are zero-padded)

    # Whole-tile column masks -- no unaligned lane slicing of p.
    col = jax.lax.broadcasted_iota(jnp.int32, p.shape, 1)
    pi_mask = col < NC
    mu_mask = (col >= NC) & (col < NC + NC * ND)
    sg_mask = (col >= NC + NC * ND) & (col < P)

    # op 1: mixture coefficients -> masked softmax over the first NC columns
    pi_logits = jnp.where(pi_mask, p, -jnp.inf)
    m = jnp.max(pi_logits, axis=1, keepdims=True)
    e = jnp.exp(pi_logits - m)            # exp(-inf) = 0 outside the pi block
    denom = jnp.sum(e, axis=1, keepdims=True)
    pi_val = e / denom

    # op 3: diagonal scales -> ELU(x) + 1 (exp only on the negative branch)
    sg_val = jnp.where(p > 0.0, p, jnp.exp(jnp.minimum(p, 0.0)) - 1.0) + 1.0

    # op 2 (means) is identity; fuse the three ops into ONE lane-dense store.
    out_ref[...] = jnp.where(pi_mask, pi_val,
                             jnp.where(mu_mask, p,
                                       jnp.where(sg_mask, sg_val, 0.0)))


# ---------------------------- host wrapper --------------------------------
@functools.partial(jax.jit, static_argnames=("block_b",))
def mdn_forward(features, w1, b1, w2, b2, block_b=256):
    """Fused MDN forward. Returns (pi, mu, sigma)."""
    b_in, f_in = features.shape
    h_in = w1.shape[1]
    p_in = w2.shape[1]

    # Batch tiling: tile size is a multiple of 8 sublanes, capped at block_b.
    tb = min(block_b, _round_up(b_in, 8))
    b_pad = _round_up(b_in, tb)

    # Pad batch rows and the final-GEMM output dim to full lanes (zeros).
    x_p = jnp.zeros((b_pad, f_in), features.dtype).at[:b_in].set(features)
    w2_p = jnp.zeros((h_in, P_PAD), w2.dtype).at[:, :p_in].set(w2)
    b1_2d = b1.reshape(1, h_in)
    b2_2d = jnp.zeros((1, P_PAD), b2.dtype).at[:, :p_in].set(b2.reshape(1, p_in))

    out = pl.pallas_call(
        mdn_kernel,
        out_shape=jax.ShapeDtypeStruct((b_pad, P_PAD), jnp.float32),
        grid=(b_pad // tb,),
        in_specs=[
            pl.BlockSpec((tb, f_in), lambda i: (i, 0)),     # features tile
            pl.BlockSpec((f_in, h_in), lambda i: (0, 0)),   # w1 (resident)
            pl.BlockSpec((1, h_in), lambda i: (0, 0)),      # b1
            pl.BlockSpec((h_in, P_PAD), lambda i: (0, 0)),  # w2 (lane-padded)
            pl.BlockSpec((1, P_PAD), lambda i: (0, 0)),     # b2 (lane-padded)
        ],
        out_specs=pl.BlockSpec((tb, P_PAD), lambda i: (i, 0)),
        compiler_params=pltpu.CompilerParams(
            dimension_semantics=("parallel",)),
    )(x_p, w1, b1_2d, w2_p, b2_2d)

    # Glue (outside the kernel): drop padding, split per-op slices, reshape.
    out = out[:b_in]
    pi = out[:, :NC]
    mu = out[:, NC:NC + NC * ND].reshape(b_in, NC, ND)
    sigma = out[:, NC + NC * ND:P].reshape(b_in, NC, ND)
    return pi, mu, sigma


# ---------------------------- reference (pure JAX) -------------------------
def mdn_reference(features, w1, b1, w2, b2):
    b_in = features.shape[0]
    h = jnp.maximum(features @ w1 + b1, 0.0)
    p = h @ w2 + b2
    pi_free = p[:, 0:NC]
    mu_free = p[:, NC:NC + NC * ND]
    sg_free = p[:, NC + NC * ND:P]
    pi = jax.nn.softmax(pi_free, axis=1)
    mu = mu_free.reshape(b_in, NC, ND)
    sigma = (jnp.where(sg_free > 0.0, sg_free,
                       jnp.exp(jnp.minimum(sg_free, 0.0)) - 1.0) + 1.0
             ).reshape(b_in, NC, ND)
    return pi, mu, sigma


if __name__ == "__main__":
    B, F, H = 8, 32, 64        # small demo shapes consistent with the module

    key = jax.random.PRNGKey(0)
    k_x, k_w1, k_b1, k_w2, k_b2, k_x2 = jax.random.split(key, 6)

    features = jax.random.normal(k_x, (B, F), dtype=jnp.float32)
    w1 = 0.1 * jax.random.normal(k_w1, (F, H), dtype=jnp.float32)
    b1 = 0.1 * jax.random.normal(k_b1, (H,), dtype=jnp.float32)
    w2 = 0.1 * jax.random.normal(k_w2, (H, P), dtype=jnp.float32)
    b2 = 0.1 * jax.random.normal(k_b2, (P,), dtype=jnp.float32)

    # Small-batch path (single grid step).
    pi, mu, sigma = mdn_forward(features, w1, b1, w2, b2)
    jax.block_until_ready((pi, mu, sigma))
    pi_r, mu_r, sigma_r = mdn_reference(features, w1, b1, w2, b2)
    assert jnp.allclose(pi, pi_r, atol=1e-5), "pi mismatch"
    assert jnp.allclose(mu, mu_r, atol=1e-5), "mu mismatch"
    assert jnp.allclose(sigma, sigma_r, atol=1e-5), "sigma mismatch"

    # Larger, non-multiple batch to exercise the tiled / padded grid path.
    B2 = 300
    features2 = jax.random.normal(k_x2, (B2, F), dtype=jnp.float32)
    pi2, mu2, sigma2 = mdn_forward(features2, w1, b1, w2, b2)
    jax.block_until_ready((pi2, mu2, sigma2))
    pi2_r, mu2_r, sigma2_r = mdn_reference(features2, w1, b1, w2, b2)
    assert jnp.allclose(pi2, pi2_r, atol=1e-5), "pi mismatch (tiled)"
    assert jnp.allclose(mu2, mu2_r, atol=1e-5), "mu mismatch (tiled)"
    assert jnp.allclose(sigma2, sigma2_r, atol=1e-5), "sigma mismatch (tiled)"

    print("KERNEL_OK")
</pallas_src>

<mosaic_0001>
module attributes {stable_mosaic.version = 11 : i64} {
  func.func @mdn_kernel(%arg0: i32, %arg1: memref<8x32xf32, #tpu.memory_space<vmem>>, %arg2: memref<32x64xf32, #tpu.memory_space<vmem>>, %arg3: memref<1x64xf32, #tpu.memory_space<vmem>>, %arg4: memref<64x128xf32, #tpu.memory_space<vmem>>, %arg5: memref<1x128xf32, #tpu.memory_space<vmem>>, %arg6: memref<8x128xf32, #tpu.memory_space<vmem>>) attributes {dimension_semantics = [#tpu.dimension_semantics<parallel>], iteration_bounds = array<i64: 1>, scalar_prefetch = 0 : i64, scratch_operands = 0 : i64, tpu.core_type = #tpu.core_type<tc>, window_params = [{transform_indices = @transform_0, window_bounds = array<i64: 8, 32>}, {pipeline_mode = #tpu.pipeline_mode<synchronous>, transform_indices = @transform_1, window_bounds = array<i64: 32, 64>}, {pipeline_mode = #tpu.pipeline_mode<synchronous>, transform_indices = @transform_2, window_bounds = array<i64: 1, 64>}, {pipeline_mode = #tpu.pipeline_mode<synchronous>, transform_indices = @transform_3, window_bounds = array<i64: 64, 128>}, {pipeline_mode = #tpu.pipeline_mode<synchronous>, transform_indices = @transform_4, window_bounds = array<i64: 1, 128>}, {transform_indices = @transform_5, window_bounds = array<i64: 8, 128>}]} {
    %c0 = arith.constant 0 : index
    %c0_0 = arith.constant 0 : index
    %0 = vector.load %arg1[%c0, %c0_0] : memref<8x32xf32, #tpu.memory_space<vmem>>, vector<8x32xf32>
    %c0_1 = arith.constant 0 : index
    %c0_2 = arith.constant 0 : index
    %1 = vector.load %arg2[%c0_1, %c0_2] : memref<32x64xf32, #tpu.memory_space<vmem>>, vector<32x64xf32>
    %cst = arith.constant dense<0.000000e+00> : vector<8x64xf32>
    %2 = tpu.matmul %0, %1, %cst {dimension_numbers = #tpu.dot_dimension_numbers<[1], [0], [0], [1], [0, 0, 1, 1], [], []>} : vector<8x32xf32>, vector<32x64xf32>, vector<8x64xf32> -> vector<8x64xf32>
    %c0_3 = arith.constant 0 : index
    %c0_4 = arith.constant 0 : index
    %3 = vector.load %arg3[%c0_3, %c0_4] : memref<1x64xf32, #tpu.memory_space<vmem>>, vector<1x64xf32>
    %4 = vector.broadcast %3 : vector<1x64xf32> to vector<8x64xf32>
    %5 = arith.addf %2, %4 : vector<8x64xf32>
    %cst_5 = arith.constant 0.000000e+00 : f32
    %6 = vector.broadcast %cst_5 : f32 to vector<8x64xf32>
    %7 = arith.maximumf %5, %6 : vector<8x64xf32>
    %c0_6 = arith.constant 0 : index
    %c0_7 = arith.constant 0 : index
    %8 = vector.load %arg4[%c0_6, %c0_7] : memref<64x128xf32, #tpu.memory_space<vmem>>, vector<64x128xf32>
    %cst_8 = arith.constant dense<0.000000e+00> : vector<8x128xf32>
    %9 = tpu.matmul %7, %8, %cst_8 {dimension_numbers = #tpu.dot_dimension_numbers<[1], [0], [0], [1], [0, 0, 1, 1], [], []>} : vector<8x64xf32>, vector<64x128xf32>, vector<8x128xf32> -> vector<8x128xf32>
    %c0_9 = arith.constant 0 : index
    %c0_10 = arith.constant 0 : index
    %10 = vector.load %arg5[%c0_9, %c0_10] : memref<1x128xf32, #tpu.memory_space<vmem>>, vector<1x128xf32>
    %11 = vector.broadcast %10 : vector<1x128xf32> to vector<8x128xf32>
    %12 = arith.addf %9, %11 : vector<8x128xf32>
    %13 = tpu.iota {dimensions = array<i32: 1>} : vector<8x128xi32>
    %c4_i32 = arith.constant 4 : i32
    %14 = vector.broadcast %c4_i32 : i32 to vector<8x128xi32>
    %15 = arith.cmpi slt, %13, %14 : vector<8x128xi32>
    %c4_i32_11 = arith.constant 4 : i32
    %16 = vector.broadcast %c4_i32_11 : i32 to vector<8x128xi32>
    %17 = arith.cmpi sge, %13, %16 : vector<8x128xi32>
    %c12_i32 = arith.constant 12 : i32
    %18 = vector.broadcast %c12_i32 : i32 to vector<8x128xi32>
    %19 = arith.cmpi slt, %13, %18 : vector<8x128xi32>
    %20 = arith.andi %17, %19 : vector<8x128xi1>
    %c12_i32_12 = arith.constant 12 : i32
    %21 = vector.broadcast %c12_i32_12 : i32 to vector<8x128xi32>
    %22 = arith.cmpi sge, %13, %21 : vector<8x128xi32>
    %c20_i32 = arith.constant 20 : i32
    %23 = vector.broadcast %c20_i32 : i32 to vector<8x128xi32>
    %24 = arith.cmpi slt, %13, %23 : vector<8x128xi32>
    %25 = arith.andi %22, %24 : vector<8x128xi1>
    %cst_13 = arith.constant 0xFF800000 : f32
    %26 = vector.broadcast %cst_13 : f32 to vector<8x128xf32>
    %27 = arith.select %15, %12, %26 : vector<8x128xi1>, vector<8x128xf32>
    %cst_14 = arith.constant dense<0xFF800000> : vector<8xf32>
    %28 = vector.multi_reduction <maximumf>, %27, %cst_14 [1] : vector<8x128xf32> to vector<8xf32>
    %29 = vector.shape_cast %28 : vector<8xf32> to vector<8x1xf32>
    %30 = vector.broadcast %29 : vector<8x1xf32> to vector<8x128xf32>
    %31 = arith.subf %27, %30 : vector<8x128xf32>
    %32 = math.exp %31 : vector<8x128xf32>
    %cst_15 = arith.constant dense<0.000000e+00> : vector<8xf32>
    %33 = vector.multi_reduction <add>, %32, %cst_15 [1] : vector<8x128xf32> to vector<8xf32>
    %34 = vector.shape_cast %33 : vector<8xf32> to vector<8x1xf32>
    %35 = vector.broadcast %34 : vector<8x1xf32> to vector<8x128xf32>
    %36 = arith.divf %32, %35 : vector<8x128xf32>
    %cst_16 = arith.constant 0.000000e+00 : f32
    %37 = vector.broadcast %cst_16 : f32 to vector<8x128xf32>
    %38 = arith.cmpf ogt, %12, %37 : vector<8x128xf32>
    %cst_17 = arith.constant 0.000000e+00 : f32
    %39 = vector.broadcast %cst_17 : f32 to vector<8x128xf32>
    %40 = arith.minimumf %12, %39 : vector<8x128xf32>
    %41 = math.exp %40 : vector<8x128xf32>
    %cst_18 = arith.constant 1.000000e+00 : f32
    %42 = vector.broadcast %cst_18 : f32 to vector<8x128xf32>
    %43 = arith.subf %41, %42 : vector<8x128xf32>
    %44 = arith.select %38, %12, %43 : vector<8x128xi1>, vector<8x128xf32>
    %cst_19 = arith.constant 1.000000e+00 : f32
    %45 = vector.broadcast %cst_19 : f32 to vector<8x128xf32>
    %46 = arith.addf %44, %45 : vector<8x128xf32>
    %cst_20 = arith.constant 0.000000e+00 : f32
    %47 = vector.broadcast %cst_20 : f32 to vector<8x128xf32>
    %48 = arith.select %25, %46, %47 : vector<8x128xi1>, vector<8x128xf32>
    %49 = arith.select %20, %12, %48 : vector<8x128xi1>, vector<8x128xf32>
    %50 = arith.select %15, %36, %49 : vector<8x128xi1>, vector<8x128xf32>
    %c0_21 = arith.constant 0 : index
    %c0_22 = arith.constant 0 : index
    %51 = vector.load %arg6[%c0_21, %c0_22] : memref<8x128xf32, #tpu.memory_space<vmem>>, vector<8x128xf32>
    tpu.vector_store %arg6[%c0_21, %c0_22], %50 {strides = array<i32>} : memref<8x128xf32, #tpu.memory_space<vmem>>, vector<8x128xf32>,
    return
  }
  func.func @transform_0(%arg0: i32) -> (i32, i32) {
    %c0_i32 = arith.constant 0 : i32
    %c0_i32_0 = arith.constant 0 : i32
    return %arg0, %c0_i32 : i32, i32
  }
  func.func @transform_1(%arg0: i32) -> (i32, i32) {
    %c0_i32 = arith.constant 0 : i32
    %c0_i32_0 = arith.constant 0 : i32
    %c0_i32_1 = arith.constant 0 : i32
    return %c0_i32, %c0_i32_0 : i32, i32
  }
  func.func @transform_2(%arg0: i32) -> (i32, i32) {
    %c0_i32 = arith.constant 0 : i32
    %c0_i32_0 = arith.constant 0 : i32
    %c0_i32_1 = arith.constant 0 : i32
    return %c0_i32, %c0_i32_0 : i32, i32
  }
  func.func @transform_3(%arg0: i32) -> (i32, i32) {
    %c0_i32 = arith.constant 0 : i32
    %c0_i32_0 = arith.constant 0 : i32
    %c0_i32_1 = arith.constant 0 : i32
    return %c0_i32, %c0_i32_0 : i32, i32
  }
  func.func @transform_4(%arg0: i32) -> (i32, i32) {
    %c0_i32 = arith.constant 0 : i32
    %c0_i32_0 = arith.constant 0 : i32
    %c0_i32_1 = arith.constant 0 : i32
    return %c0_i32, %c0_i32_0 : i32, i32
  }
  func.func @transform_5(%arg0: i32) -> (i32, i32) {
    %c0_i32 = arith.constant 0 : i32
    %c0_i32_0 = arith.constant 0 : i32
    return %arg0, %c0_i32 : i32, i32
  }
}

</mosaic_0001>

<bundles_post_ra>
// kernel: mdn_forward.1
= control target key start
LH: loop header
LB: loop body
LE: loop exit
PB: predicated region body
PF: predicated region fallthrough
CT: control target
= control target key end

     0   :  { %v306_v0 = vmov 0.0|0.0   ;;  %vm307_vm0 = vmmov 0   ;;  %v308_v4 = vmov 0.0   ;;  %vm32_vm1 = vcmask 261120   ;;  %s389_s1 = inlined_call_operand.vmem [shape: f32[32,64], index: 1, kind: input, shape index: {}]   ;;  %s390_s3 = inlined_call_operand.vmem [shape: f32[64,128], index: 3, kind: input, shape index: {}]   ;;  %s391_s0 = inlined_call_operand.vmem [shape: f32[8,32], index: 0, kind: input, shape index: {}]   ;;  %s392_s2 = inlined_call_operand.vmem [shape: f32[1,64], index: 2, kind: input, shape index: {}]   ;;  %s393_s4 = inlined_call_operand.vmem [shape: f32[1,128], index: 4, kind: input, shape index: {}]   ;;  %s394_s5 = inlined_call_operand.vmem [shape: f32[8,128], index: 5, kind: output, shape index: {}]  }
   0x1   :  { %279 = vmatprep.subr.bf16.mxu0 %v306_v0  ;;  %v21_v1 = vld [vmem:[%s389_s1] sm:$0xff]  ;;  %v22_v2 = vld [vmem:[%s389_s1 + $0x8] sm:$0xff]  ;;  %v23_v3 = vld [vmem:[%s389_s1 + $0x10] sm:$0xff]  ;;  %257 = vmatprep.mubr.msk.f32.mxu0 %vm307_vm0, %v308_v4  ;;  %vm122_vm2 = vcmask 523264   ;;  %v196_v26 = vlaneseq }
   0x2   :  { %v280_v5 = vpack.c.bf16 %v22_v2, %v21_v1  ;;  %v24_v6 = vld [vmem:[%s389_s1 + $0x18] sm:$0xff]  ;;  %285 = vmatprep.subr.bf16.mxu1 %v306_v0  ;;  %v107_v7 = vld [vmem:[%s390_s3] sm:$0xff]  ;;  %276 = vmatprep.mubr.msk.f32.mxu1 %vm307_vm0, %v308_v4  ;;  %v108_v8 = vld [vmem:[%s390_s3 + $0x8] sm:$0xff] }
   0x3   :  { %v109_v9 = vld [vmem:[%s390_s3 + $0x10] sm:$0xff]  ;;  %v110_v10 = vld [vmem:[%s390_s3 + $0x18] sm:$0xff]  ;;  %v283_v11 = vpack.c.bf16 %v24_v6, %v23_v3  ;;  %v286_v12 = vpack.c.bf16 %v108_v8, %v107_v7  ;;  %v111_v14 = vld [vmem:[%s390_s3 + $0x20] sm:$0xff]  ;;  %v197_v27 = vand.u32 127, %v196_v26 }
   0x4   :  { %281 = vmatpush3.bf16.msra.mxu0 %v280_v5  ;;  %v289_v13 = vpack.c.bf16 %v110_v10, %v109_v9  ;;  %v112_v15 = vld [vmem:[%s390_s3 + $0x28] sm:$0xff]  ;;  %v20_v16 = vld [vmem:[%s391_s0] sm:$0xff]  ;;  %v113_v18 = vld [vmem:[%s390_s3 + $0x30] sm:$0xff] }
   0x5   :  { %282 = vmatprep.subr.bf16.mxu0 %v306_v0  ;;  %287 = vmatpush3.bf16.msra.mxu1 %v286_v12  ;;  %v292_v17 = vpack.c.bf16 %v112_v15, %v111_v14  ;;  %v114_v19 = vld [vmem:[%s390_s3 + $0x38] sm:$0xff]  ;;  %v230_v21 = vld [vmem:[%s392_s2] ss:$0 sm:$0xff]  ;;  %vm198_vm3 = vcmp.lt.s32.totalorder %v197_v27, 4  ;;  %vm202_vm4 = vcmp.ge.s32.totalorder %v197_v27, 12  ;;  %vm203_vm5 = vcmp.lt.s32.totalorder %v197_v27, 20 }
   0x6   :  { %288 = vmatprep.subr.bf16.mxu1 %v306_v0  ;;  %v295_v20 = vpack.c.bf16 %v114_v19, %v113_v18  ;;  %v232_v28 = vld [vmem:[%s393_s4] ss:$0 sm:$0xff]  ;;  %vm199_vm6 = vcmp.ge.s32.totalorder %v197_v27, 4  ;;  %vm200_vm7 = vcmp.lt.s32.totalorder %v197_v27, 12  ;;  %vm204_vm9 = vmand %vm202_vm4, %vm203_vm5 }
   0x7   :  { %vm201_vm10 = vmand %vm199_vm6, %vm200_vm7 }
   0x8   :  { %284 = vmatpush3.bf16.msra.mxu0 %v283_v11 }
   0x9   :  { %290 = vmatpush3.bf16.msra.mxu1 %v289_v13 }
   0xa   :  { %291 = vmatprep.subr.bf16.mxu1 %v306_v0 }
   0xb   :  { %258 = vmatmul.mubr.msk.f32.vlgmr.msra.gmra.mrb[0].mxu0 %vm32_vm1, %v20_v16 }
   0xd   :  { %293 = vmatpush3.bf16.msra.mxu1 %v292_v17 }
   0xe   :  { %294 = vmatprep.subr.bf16.mxu1 %v306_v0 }
  0x11   :  { %296 = vmatpush3.bf16.msra.mxu1 %v295_v20 }
  0xde   :  { %v102_v22 = vpop.f32.mrb[0].mxu0 }
  0xdf   :  { %v103_v23 = vadd.f32 %v230_v21, %v102_v22  ;;  %v259_v24 = vpop.f32.mrb[1].mxu0 }
  0xe1   :  { %v106_v25 = vmax.f32 %v103_v23, 0.0 }
  0xe3   :  { %277 = vmatmul.mubr.msk.f32.vlgmr.msra.gmra.mrb[0].mxu1 %vm122_vm2, %v106_v25 }
 0x1b6   :  { %v192_v29 = vpop.f32.mrb[0].mxu1 }
 0x1b7   :  { %v193_v30 = vadd.f32 %v232_v28, %v192_v29  ;;  %v278_v31 = vpop.f32.mrb[1].mxu1 }
 0x1b9   :  { %v216_v32 = vmin.f32 %v193_v30, 0.0  ;;  %v205_v33 = vsel %vm198_vm3, %v193_v30, -inf  ;;  %vm215_vm8 = vcmp.gt.f32.partialorder %v193_v30, 0.0 }
 0x1ba   :  { %206 = vmax.xlane.f32.xlu0 %v205_v33 }
 0x1bb   :  { %v217_v34 = vmul.f32 1.442695, %v216_v32 }
 0x1bd   :  { %300 = vpow2.f32 %v217_v34 }
 0x1c7   :  { %v301_v35 = vpop.eup %300 }
 0x1c8   :  { %v234_v36 = vadd.f32 -1.0, %v301_v35 }
 0x1ca   :  { %v220_v37 = vsel %vm215_vm8, %v193_v30, %v234_v36 }
 0x1cb   :  { %v221_v38 = vadd.f32 1.0, %v220_v37 }
 0x1cd   :  { %v222_v39 = vsel %vm204_vm9, %v221_v38, 0.0 }
 0x1ce   :  { %v223_v40 = vsel %vm201_vm10, %v193_v30, %v222_v39 }
 0x247   :  { %v207_v41 = vpop.xlane.xlu0 %206 }
 0x248   :  { %v208_v42 = vsub.f32 %v205_v33, %v207_v41 }
 0x24a   :  { %v209_v43 = vmul.f32 1.442695, %v208_v42 }
 0x24c   :  { %302 = vpow2.f32 %v209_v43 }
 0x256   :  { %v303_v44 = vpop.eup %302 }
 0x257   :  { %211 = vadd.xlane.f32.xlu0 %v303_v44 }
 0x2e4   :  { %v212_v45 = vpop.xlane.xlu0 %211 }
 0x2e5   :  { %304 = vrcp.f32 %v212_v45 }
 0x2ef   :  { %v305_v46 = vpop.eup %304 }
 0x2f0   :  { %v214_v47 = vmul.f32 %v305_v46, %v303_v44 }
 0x2f2   :  { %v224_v48 = vsel %vm198_vm3, %v214_v47, %v223_v40 }
 0x2f3   :  { %225 = vst [vmem:[%s394_s5] sm:$0xff] %v224_v48 }

</bundles_post_ra>
